<compile_context>
chip_gen: v5e
topology: v5e:2x2
jax: 0.10.0
libtpu: 0.0.40
codegen_flags: <defaults>
</compile_context>

<pallas_src>
import jax
import jax.numpy as jnp
from jax.experimental import pallas as pl
from jax.experimental.pallas import tpu as pltpu

_LANES = 128  # TPU vreg lane width


def _round_up(x: int, m: int) -> int:
    return (x + m - 1) // m * m


def _cdiv(a: int, b: int) -> int:
    return (a + b - 1) // b


def _make_mf_kernel(rows: int, d_total: int, d_tile: int, needs_d_mask: bool):
    """Kernel over one (TB, d_tile) tile; accumulates f32 row sums."""

    def kernel(user_ref, item_ref, out_ref, acc_ref):
        j = pl.program_id(1)  # reduction (D) axis, fastest-varying

        @pl.when(j == 0)
        def _init():
            acc_ref[...] = jnp.zeros_like(acc_ref)

        # Multiply in the native input dtype (bf16 VPU on v6e/v7x); upcast
        # only the product for the f32 reduction/accumulation.
        prod = (user_ref[...] * item_ref[...]).astype(jnp.float32)
        if needs_d_mask:
            # The last D block can run past D; zero the garbage columns so
            # they do not pollute valid rows' sums.
            col = jax.lax.broadcasted_iota(jnp.int32, prod.shape, 1) + j * d_tile
            prod = jnp.where(col < d_total, prod, 0.0)

        # Free sublane-splitting reshape, then a cross-lane reduce on the XLU.
        # Result is lane-dense -> unmasked full-width store at the end.
        # TODO(synk): if the bundle shows the XLU/relayout binding at D<128,
        # repack inputs as (B*D//128, 128) with a segmented roll+add reduce
        # (or offload the row-sum to the MXU via a ones (D,1) operand).
        acc_ref[...] += jnp.sum(prod.reshape(rows, _LANES, -1), axis=-1)

        @pl.when(j == pl.num_programs(1) - 1)
        def _store():
            out_ref[...] = acc_ref[...].astype(out_ref.dtype)

    return kernel


def mf_forward(user: jax.Array, item: jax.Array,
               *, target_block_bytes: int = 4 * 1024 * 1024) -> jax.Array:
    """rating[b] = sum_d user[b, d] * item[b, d]  (== torch.sum(user * item, 1))."""
    assert user.ndim == 2 and user.shape == item.shape, (user.shape, item.shape)
    B, D = user.shape
    out_dtype = jnp.result_type(user.dtype, item.dtype)
    if B == 0 or D == 0:
        return jnp.zeros((B,), out_dtype)

    in_itemsize = max(jnp.dtype(user.dtype).itemsize, jnp.dtype(item.dtype).itemsize)
    out_itemsize = jnp.dtype(out_dtype).itemsize

    # ---- block sizing: budget in f32 working bytes (covers upcast temporaries) ----
    elems_per_block = max(target_block_bytes // 4, 128 * 1024)  # f32 elems per input blk

    # D (reduction) tiling: keep the full D when affordable at TB=1024,
    # otherwise tile in multiples of 128 (prefer an exact divisor of D so no
    # edge-column masking is needed).
    d_budget = max(_LANES, (elems_per_block // 1024) // _LANES * _LANES)
    if D <= d_budget:
        d_tile, needs_d_mask = D, False
    else:
        d_tile = d_budget
        for cand in range(d_budget, _LANES - 1, -_LANES):
            if D % cand == 0:
                d_tile = cand
                break
        needs_d_mask = (D % d_tile) != 0
    num_d = _cdiv(D, d_tile)

    # Batch tiling.
    b_aligned = _round_up(B, _LANES)
    if b_aligned <= 1024:
        # Tiny batch: single block; pad at most ~1023 rows (negligible copy).
        tb = b_aligned
        if B != b_aligned:
            pad = ((0, b_aligned - B), (0, 0))
            user = jnp.pad(user, pad)
            item = jnp.pad(item, pad)
        grid_b = 1
    else:
        # Rows per block targeting ~target_block_bytes of f32 working set, in
        # multiples of 1024 (keeps the (TB//128, 128) output block
        # (8,128)-aligned).  No input padding: the last batch block is a
        # bounds-limited edge block whose garbage rows land at output
        # positions >= B and get sliced off below.
        tb = max(1024, (elems_per_block // d_tile) // 1024 * 1024)
        # Guarantee >= 2 batch steps so double-buffering pipelines and v7x's
        # two TensorCores both get work.
        half = _round_up(_cdiv(b_aligned, 2), 1024)
        tb = min(tb, max(1024, half))
        grid_b = _cdiv(B, tb)

    rows = tb // _LANES
    out_rows = grid_b * rows

    # ---- VMEM budgeting (includes the f32 product temporaries) ----
    block_in_bytes = tb * d_tile * in_itemsize
    block_f32_bytes = tb * d_tile * 4
    acc_bytes = rows * _LANES * 4
    out_block_bytes = rows * _LANES * out_itemsize
    total_steps = grid_b * num_d
    n_buf = 3 if (block_in_bytes <= (1 << 20) and total_steps >= 4) else 2
    vmem_est = (2 * n_buf * block_in_bytes      # pipelined input buffers
                + 3 * block_f32_bytes           # product / upcast / reduce temps
                + acc_bytes + 2 * out_block_bytes
                + (2 << 20))                    # headroom
    vmem_limit = int(min(48 * 1024 * 1024, max(32 * 1024 * 1024, vmem_est)))

    in_spec_kwargs = {"pipeline_mode": pl.Buffered(3)} if n_buf == 3 else {}
    in_specs = [
        pl.BlockSpec((tb, d_tile), lambda i, j: (i, j), **in_spec_kwargs),
        pl.BlockSpec((tb, d_tile), lambda i, j: (i, j), **in_spec_kwargs),
    ]

    kernel = _make_mf_kernel(rows, D, d_tile, needs_d_mask)

    out = pl.pallas_call(
        kernel,
        out_shape=jax.ShapeDtypeStruct((out_rows, _LANES), out_dtype),
        grid=(grid_b, num_d),
        in_specs=in_specs,
        out_specs=pl.BlockSpec((rows, _LANES), lambda i, j: (i, 0)),
        scratch_shapes=[pltpu.VMEM((rows, _LANES), jnp.float32)],
        compiler_params=pltpu.CompilerParams(
            # TODO(synk): try pltpu.CORE_PARALLEL on the batch axis for v7x's 2 TCs.
            dimension_semantics=("parallel", "arbitrary"),
            vmem_limit_bytes=vmem_limit,
        ),
        cost_estimate=pl.CostEstimate(
            flops=2 * B * D,
            transcendentals=0,
            bytes_accessed=2 * B * D * in_itemsize + B * out_itemsize,
        ),
    )(user, item)

    # Lane-dense (out_rows, 128) slab -> flat [B] ratings.
    return out.reshape(-1)[:B]


if __name__ == "__main__":
    key = jax.random.PRNGKey(0)
    k1, k2, k3, k4 = jax.random.split(key, 4)

    # Small shapes consistent with the module: batch=8, latent dim=32.
    B, D = 8, 32
    user = jax.random.normal(k1, (B, D), dtype=jnp.float32)
    item = jax.random.normal(k2, (B, D), dtype=jnp.float32)
    rating = jax.block_until_ready(mf_forward(user, item))
    ref = jnp.sum(user * item, axis=1)
    assert rating.shape == (B,)
    assert jnp.allclose(rating, ref, atol=1e-5, rtol=1e-5)

    # Multi-tile path with a non-tile-aligned batch (edge block, no padding).
    B2 = 3000
    user2 = jax.random.normal(k3, (B2, D), dtype=jnp.float32)
    item2 = jax.random.normal(k4, (B2, D), dtype=jnp.float32)
    rating2 = jax.block_until_ready(mf_forward(user2, item2))
    ref2 = jnp.sum(user2 * item2, axis=1)
    assert rating2.shape == (B2,)
    assert jnp.allclose(rating2, ref2, atol=1e-5, rtol=1e-5)

    # bf16 path: product in bf16 (native VPU on v6e/v7x), f32 accumulation.
    user3 = user.astype(jnp.bfloat16)
    item3 = item.astype(jnp.bfloat16)
    rating3 = jax.block_until_ready(mf_forward(user3, item3))
    ref3 = jnp.sum(user3.astype(jnp.float32) * item3.astype(jnp.float32), axis=1)
    assert rating3.shape == (B,)
    assert jnp.allclose(rating3.astype(jnp.float32), ref3, atol=0.25, rtol=0.05)

    print("KERNEL_OK")
</pallas_src>

<mosaic_0001>
module attributes {stable_mosaic.version = 11 : i64} {
  func.func @kernel(%arg0: i32, %arg1: i32, %arg2: memref<128x32xf32, #tpu.memory_space<vmem>>, %arg3: memref<128x32xf32, #tpu.memory_space<vmem>>, %arg4: memref<1x128xf32, #tpu.memory_space<vmem>>, %arg5: memref<1x128xf32, #tpu.memory_space<vmem>>) attributes {dimension_semantics = [#tpu.dimension_semantics<parallel>, #tpu.dimension_semantics<arbitrary>], iteration_bounds = array<i64: 1, 1>, scalar_prefetch = 0 : i64, scratch_operands = 1 : i64, tpu.core_type = #tpu.core_type<tc>, window_params = [{transform_indices = @transform_0, window_bounds = array<i64: 128, 32>}, {transform_indices = @transform_1, window_bounds = array<i64: 128, 32>}, {transform_indices = @transform_2, window_bounds = array<i64: 1, 128>}]} {
    %c0_i32 = arith.constant 0 : i32
    %0 = arith.cmpi eq, %arg1, %c0_i32 : i32
    %1 = arith.extui %0 : i1 to i32
    %c0_i32_0 = arith.constant 0 : i32
    %2 = arith.cmpi ne, %1, %c0_i32_0 : i32
    scf.if %2 {
      %cst_10 = arith.constant 0.000000e+00 : f32
      %14 = vector.broadcast %cst_10 : f32 to vector<1x128xf32>
      %c0_11 = arith.constant 0 : index
      %c0_12 = arith.constant 0 : index
      %15 = vector.load %arg5[%c0_11, %c0_12] : memref<1x128xf32, #tpu.memory_space<vmem>>, vector<1x128xf32>
      tpu.vector_store %arg5[%c0_11, %c0_12], %14 {strides = array<i32>} : memref<1x128xf32, #tpu.memory_space<vmem>>, vector<1x128xf32>,
    } else {
    }
    %c0 = arith.constant 0 : index
    %c0_1 = arith.constant 0 : index
    %3 = vector.load %arg2[%c0, %c0_1] : memref<128x32xf32, #tpu.memory_space<vmem>>, vector<128x32xf32>
    %c0_2 = arith.constant 0 : index
    %c0_3 = arith.constant 0 : index
    %4 = vector.load %arg3[%c0_2, %c0_3] : memref<128x32xf32, #tpu.memory_space<vmem>>, vector<128x32xf32>
    %5 = arith.mulf %3, %4 : vector<128x32xf32>
    %c0_4 = arith.constant 0 : index
    %c0_5 = arith.constant 0 : index
    %6 = vector.load %arg5[%c0_4, %c0_5] : memref<1x128xf32, #tpu.memory_space<vmem>>, vector<1x128xf32>
    %7 = vector.shape_cast %5 : vector<128x32xf32> to vector<1x128x32xf32>
    %cst = arith.constant dense<0.000000e+00> : vector<1x128xf32>
    %8 = vector.multi_reduction <add>, %7, %cst [2] : vector<1x128x32xf32> to vector<1x128xf32>
    %9 = arith.addf %6, %8 : vector<1x128xf32>
    %c0_6 = arith.constant 0 : index
    %c0_7 = arith.constant 0 : index
    %10 = vector.load %arg5[%c0_6, %c0_7] : memref<1x128xf32, #tpu.memory_space<vmem>>, vector<1x128xf32>
    tpu.vector_store %arg5[%c0_6, %c0_7], %9 {strides = array<i32>} : memref<1x128xf32, #tpu.memory_space<vmem>>, vector<1x128xf32>,
    %c0_i32_8 = arith.constant 0 : i32
    %11 = arith.cmpi eq, %arg1, %c0_i32_8 : i32
    %12 = arith.extui %11 : i1 to i32
    %c0_i32_9 = arith.constant 0 : i32
    %13 = arith.cmpi ne, %12, %c0_i32_9 : i32
    scf.if %13 {
      %c0_10 = arith.constant 0 : index
      %c0_11 = arith.constant 0 : index
      %14 = vector.load %arg5[%c0_10, %c0_11] : memref<1x128xf32, #tpu.memory_space<vmem>>, vector<1x128xf32>
      %c0_12 = arith.constant 0 : index
      %c0_13 = arith.constant 0 : index
      %15 = vector.load %arg4[%c0_12, %c0_13] : memref<1x128xf32, #tpu.memory_space<vmem>>, vector<1x128xf32>
      tpu.vector_store %arg4[%c0_12, %c0_13], %14 {strides = array<i32>} : memref<1x128xf32, #tpu.memory_space<vmem>>, vector<1x128xf32>,
    } else {
    }
    return
  }
  func.func @transform_0(%arg0: i32, %arg1: i32) -> (i32, i32) {
    %c0_i32 = arith.constant 0 : i32
    return %arg0, %arg1 : i32, i32
  }
  func.func @transform_1(%arg0: i32, %arg1: i32) -> (i32, i32) {
    %c0_i32 = arith.constant 0 : i32
    return %arg0, %arg1 : i32, i32
  }
  func.func @transform_2(%arg0: i32, %arg1: i32) -> (i32, i32) {
    %c0_i32 = arith.constant 0 : i32
    %c0_i32_0 = arith.constant 0 : i32
    return %arg0, %c0_i32 : i32, i32
  }
}

</mosaic_0001>

<bundles_post_ra>
// kernel: tpu_custom_call.1
= control target key start
LH: loop header
LB: loop body
LE: loop exit
PB: predicated region body
PF: predicated region fallthrough
CT: control target
= control target key end

     0   :  { %vm66_vm0 = vcmask 261120   ;;  %s728_s0 = inlined_call_operand.vmem [shape: f32[128,32], index: 0, kind: input, shape index: {}]   ;;  %s729_s1 = inlined_call_operand.vmem [shape: f32[128,32], index: 1, kind: input, shape index: {}]   ;;  %s730_s2 = inlined_call_operand.hbm [shape: f32[1,128], index: 2, kind: output, shape index: {}]  }
   0x1   :  { %v17_v0 = vld [vmem:[%s728_s0] sm:$0xff]  ;;  %v19_v3 = vld [vmem:[%s728_s0 + $0x10] sm:$0xff]  ;;  %v18_v5 = vld [vmem:[%s728_s0 + $0x8] sm:$0xff] }
   0x2   :  { %v33_v1 = vld [vmem:[%s729_s1] sm:$0xff]  ;;  %v35_v4 = vld [vmem:[%s729_s1 + $0x10] sm:$0xff]  ;;  %v34_v6 = vld [vmem:[%s729_s1 + $0x8] sm:$0xff] }
   0x3   :  { %v49_v2 = vmul.f32 %v33_v1, %v17_v0  ;;  %v51_v7 = vmul.f32 %v35_v4, %v19_v3  ;;  %v21_v8 = vld [vmem:[%s728_s0 + $0x20] sm:$0xff]  ;;  %v20_v10 = vld [vmem:[%s728_s0 + $0x18] sm:$0xff]  ;;  %v50_v15 = vmul.f32 %v34_v6, %v18_v5  ;;  %v22_v16 = vld [vmem:[%s728_s0 + $0x28] sm:$0xff] }
   0x4   :  { %v36_v11 = vld [vmem:[%s729_s1 + $0x18] sm:$0xff]  ;;  %v37_v12 = vld [vmem:[%s729_s1 + $0x20] sm:$0xff]  ;;  %v38_v17 = vld [vmem:[%s729_s1 + $0x28] sm:$0xff] }
   0x5   :  { %v67_v9 = vsel %vm66_vm0, %v49_v2, 0.0  ;;  %v73_v13 = vsel %vm66_vm0, %v51_v7, 0.0  ;;  %v53_v14 = vmul.f32 %v37_v12, %v21_v8  ;;  %v52_v18 = vmul.f32 %v36_v11, %v20_v10  ;;  %v23_v23 = vld [vmem:[%s728_s0 + $0x30] sm:$0xff] }
   0x6   :  { %68 = vadd.xlane.f32.xlu0 %v67_v9  ;;  %74 = vadd.xlane.f32.xlu1 %v73_v13  ;;  %v54_v20 = vmul.f32 %v38_v17, %v22_v16  ;;  %v70_v21 = vsel %vm66_vm0, %v50_v15, 0.0  ;;  %v39_v24 = vld [vmem:[%s729_s1 + $0x30] sm:$0xff] }
   0x7   :  { %v79_v19 = vsel %vm66_vm0, %v53_v14, 0.0  ;;  %v76_v22 = vsel %vm66_vm0, %v52_v18, 0.0 }
   0x8   :  { %80 = vadd.xlane.f32.xlu2 %v79_v19 }
   0x9   :  { %7 = vsyncpa [#allocation4], 0  ;;  %v24_v25 = vld [vmem:[%s728_s0 + $0x38] sm:$0xff]  ;;  %v82_v27 = vsel %vm66_vm0, %v54_v20, 0.0  ;;  %v55_v28 = vmul.f32 %v39_v24, %v23_v23  ;;  %v25_v29 = vld [vmem:[%s728_s0 + $0x40] sm:$0xff]  ;;  %v577_v0 = vmov 0  }
   0xa   :  { %v40_v26 = vld [vmem:[%s729_s1 + $0x38] sm:$0xff]  ;;  %v41_v30 = vld [vmem:[%s729_s1 + $0x40] sm:$0xff]  ;;  %v26_v35 = vld [vmem:[%s728_s0 + $0x48] sm:$0xff]  ;;  %548 = vset.pattern.permute.xlu1 %v577_v0  ;;  %549 = vset.pattern.permute.xlu2 %v577_v0  ;;  %vm463_vm1 = vcmask 130112   ;;  %vm467_vm2 = vcmask 195712   ;;  %vm471_vm3 = vcmask 261312  }
   0xb   :  { %v56_v31 = vmul.f32 %v40_v26, %v24_v25  ;;  %v57_v32 = vmul.f32 %v41_v30, %v25_v29  ;;  %v85_v33 = vsel %vm66_vm0, %v55_v28, 0.0  ;;  %v42_v36 = vld [vmem:[%s729_s1 + $0x48] sm:$0xff]  ;;  %v27_v37 = vld [vmem:[%s728_s0 + $0x50] sm:$0xff]  ;;  %v28_v41 = vld [vmem:[%s728_s0 + $0x58] sm:$0xff]  ;;  %550 = vset.pattern.permute.xlu0 %v577_v0  ;;  %vm475_vm4 = vcmask 326912   ;;  %s536_s19 = sshll.u32 %s730_s2, 4  ;;  %s537_s19 = int_to_ptr.hbm [resolvable:$true] %s536_s19 }
   0xc   :  { %v43_v38 = vld [vmem:[%s729_s1 + $0x50] sm:$0xff]  ;;  %v58_v40 = vmul.f32 %v42_v36, %v26_v35  ;;  %v44_v42 = vld [vmem:[%s729_s1 + $0x58] sm:$0xff]  ;;  %v29_v47 = vld [vmem:[%s728_s0 + $0x60] sm:$0xff]  ;;  %vm479_vm5 = vcmask 392512   ;;  %vm483_vm6 = vcmask 458112   ;;  %vm487_vm7 = vcmask 523712  }
   0xd   :  { %v88_v34 = vsel %vm66_vm0, %v56_v31, 0.0  ;;  %v91_v39 = vsel %vm66_vm0, %v57_v32, 0.0  ;;  %v59_v43 = vmul.f32 %v43_v38, %v27_v37  ;;  %v60_v44 = vmul.f32 %v44_v42, %v28_v41  ;;  %v45_v48 = vld [vmem:[%s729_s1 + $0x60] sm:$0xff]  ;;  %v30_v49 = vld [vmem:[%s728_s0 + $0x68] sm:$0xff]  ;;  %v31_v53 = vld [vmem:[%s728_s0 + $0x70] sm:$0xff] }
   0xe   :  { %71 = vadd.xlane.f32.xlu0 %v70_v21  ;;  %77 = vadd.xlane.f32.xlu1 %v76_v22  ;;  %v94_v45 = vsel %vm66_vm0, %v58_v40, 0.0  ;;  %v46_v50 = vld [vmem:[%s729_s1 + $0x68] sm:$0xff]  ;;  %v61_v52 = vmul.f32 %v45_v48, %v29_v47  ;;  %v47_v54 = vld [vmem:[%s729_s1 + $0x70] sm:$0xff]  ;;  %v32_v60 = vld [vmem:[%s728_s0 + $0x78] sm:$0xff]  ;;  %vm491_vm8 = vcmask 589312   ;;  %vm495_vm9 = vcmask 654912  }
   0xf   :  { %v97_v46 = vsel %vm66_vm0, %v59_v43, 0.0  ;;  %v100_v51 = vsel %vm66_vm0, %v60_v44, 0.0  ;;  %v62_v55 = vmul.f32 %v46_v50, %v30_v49  ;;  %v63_v56 = vmul.f32 %v47_v54, %v31_v53  ;;  %v48_v61 = vld [vmem:[%s729_s1 + $0x78] sm:$0xff]  ;;  %s579_s0 = smov [#allocation3]  }
  0x10   :  { %83 = vadd.xlane.f32.xlu2 %v82_v27  ;;  %v103_v57 = vsel %vm66_vm0, %v61_v52, 0.0  ;;  %v64_v62 = vmul.f32 %v48_v61, %v32_v60  ;;  %vm499_vm10 = vcmask 720512   ;;  %vm503_vm11 = vcmask 786112   ;;  %s534_s1 = sshll.u32 %s579_s0, 4  ;;  %s535_s1 = int_to_ptr.vmem [resolvable:$true] %s534_s1 }
  0x11   :  { %v106_v58 = vsel %vm66_vm0, %v62_v55, 0.0  ;;  %v109_v59 = vsel %vm66_vm0, %v63_v56, 0.0  ;;  %vm507_vm12 = vcmask 851712   ;;  %vm511_vm13 = vcmask 917312  }
  0x12   :  { %v112_v63 = vsel %vm66_vm0, %v64_v62, 0.0  ;;  %vm515_vm14 = vcmask 982912   ;;  %vm519_vm15 = vcmask 1048512  }
  0x16   :  { %86 = vadd.xlane.f32.xlu0 %v85_v33  ;;  %89 = vadd.xlane.f32.xlu1 %v88_v34 }
  0x18   :  { %92 = vadd.xlane.f32.xlu2 %v91_v39 }
  0x1e   :  { %95 = vadd.xlane.f32.xlu0 %v94_v45  ;;  %98 = vadd.xlane.f32.xlu1 %v97_v46 }
  0x20   :  { %101 = vadd.xlane.f32.xlu2 %v100_v51 }
  0x26   :  { %104 = vadd.xlane.f32.xlu0 %v103_v57  ;;  %107 = vadd.xlane.f32.xlu1 %v106_v58 }
  0x28   :  { %110 = vadd.xlane.f32.xlu2 %v109_v59 }
  0x2e   :  { %113 = vadd.xlane.f32.xlu0 %v112_v63 }
  0x79   :  { %v69_v1 = vpop.xlane.xlu0 %68  ;;  %v75_v20 = vpop.xlane.xlu1 %74 }
  0x7a   :  { %v131_v2 = vperm.slane %v69_v1, 0  ;;  %v132_v3 = vperm.slane %v69_v1, 1  ;;  %v133_v4 = vperm.slane %v69_v1, 2  ;;  %v134_v5 = vperm.slane %v69_v1, 3 }
  0x7b   :  { %v135_v6 = vperm.slane %v69_v1, 4  ;;  %v136_v7 = vperm.slane %v69_v1, 5  ;;  %v137_v8 = vperm.slane %v69_v1, 6  ;;  %v138_v9 = vperm.slane %v69_v1, 7  ;;  %v81_v40 = vpop.xlane.xlu2 %80 }
  0x7c   :  { %259 = vst [vmem:[#allocation1] ss:$9 sm:$0xff] %v131_v2  ;;  %v147_v21 = vperm.slane %v75_v20, 0  ;;  %v148_v22 = vperm.slane %v75_v20, 1  ;;  %v149_v23 = vperm.slane %v75_v20, 2  ;;  %v150_v25 = vperm.slane %v75_v20, 3 }
  0x7d   :  { %261 = vst [vmem:[#allocation1 + $0x1] ss:$9 sm:$0xff] %v132_v3  ;;  %v151_v26 = vperm.slane %v75_v20, 4  ;;  %v152_v27 = vperm.slane %v75_v20, 5  ;;  %v153_v28 = vperm.slane %v75_v20, 6  ;;  %v154_v29 = vperm.slane %v75_v20, 7 }
  0x7e   :  { %263 = vst [vmem:[#allocation1 + $0x2] ss:$9 sm:$0xff] %v133_v4  ;;  %v163_v41 = vperm.slane %v81_v40, 0  ;;  %v164_v42 = vperm.slane %v81_v40, 1  ;;  %v165_v43 = vperm.slane %v81_v40, 2  ;;  %v166_v45 = vperm.slane %v81_v40, 3 }
  0x7f   :  { %265 = vst [vmem:[#allocation1 + $0x3] ss:$9 sm:$0xff] %v134_v5  ;;  %v167_v46 = vperm.slane %v81_v40, 4  ;;  %v168_v47 = vperm.slane %v81_v40, 5  ;;  %v169_v48 = vperm.slane %v81_v40, 6  ;;  %v170_v49 = vperm.slane %v81_v40, 7 }
  0x80   :  { %267 = vst [vmem:[#allocation1 + $0x4] ss:$9 sm:$0xff] %v135_v6 }
  0x81   :  { %269 = vst [vmem:[#allocation1 + $0x5] ss:$9 sm:$0xff] %v136_v7  ;;  %v72_v10 = vpop.xlane.xlu0 %71  ;;  %v78_v30 = vpop.xlane.xlu1 %77 }
  0x82   :  { %271 = vst [vmem:[#allocation1 + $0x6] ss:$9 sm:$0xff] %v137_v8  ;;  %v139_v11 = vperm.slane %v72_v10, 0  ;;  %v140_v12 = vperm.slane %v72_v10, 1  ;;  %v141_v13 = vperm.slane %v72_v10, 2  ;;  %v142_v15 = vperm.slane %v72_v10, 3 }
  0x83   :  { %273 = vst [vmem:[#allocation1 + $0x7] ss:$9 sm:$0xff] %v138_v9  ;;  %v143_v16 = vperm.slane %v72_v10, 4  ;;  %v144_v17 = vperm.slane %v72_v10, 5  ;;  %v145_v18 = vperm.slane %v72_v10, 6  ;;  %v146_v19 = vperm.slane %v72_v10, 7  ;;  %v84_v50 = vpop.xlane.xlu2 %83 }
  0x84   :  { %v155_v31 = vperm.slane %v78_v30, 0  ;;  %v156_v32 = vperm.slane %v78_v30, 1  ;;  %v157_v33 = vperm.slane %v78_v30, 2  ;;  %v158_v35 = vperm.slane %v78_v30, 3 }
  0x85   :  { %v159_v36 = vperm.slane %v78_v30, 4  ;;  %v160_v37 = vperm.slane %v78_v30, 5  ;;  %v161_v38 = vperm.slane %v78_v30, 6  ;;  %v162_v39 = vperm.slane %v78_v30, 7 }
  0x86   :  { %v171_v51 = vperm.slane %v84_v50, 0  ;;  %v172_v52 = vperm.slane %v84_v50, 1  ;;  %v173_v53 = vperm.slane %v84_v50, 2  ;;  %v174_v55 = vperm.slane %v84_v50, 3 }
  0x87   :  { %v175_v56 = vperm.slane %v84_v50, 4  ;;  %v176_v57 = vperm.slane %v84_v50, 5  ;;  %v177_v58 = vperm.slane %v84_v50, 6  ;;  %v178_v59 = vperm.slane %v84_v50, 7 }
  0x89   :  { %v87_v60 = vpop.xlane.xlu0 %86  ;;  %v90_v6 = vpop.xlane.xlu1 %89 }
  0x8a   :  { %v274_v14 = vld [vmem:[#allocation1] sm:$0xff]  ;;  %v179_v61 = vperm.slane %v87_v60, 0  ;;  %v180_v62 = vperm.slane %v87_v60, 1  ;;  %v181_v63 = vperm.slane %v87_v60, 2  ;;  %v182_v1 = vperm.slane %v87_v60, 3 }
  0x8b   :  { %275 = vst [vmem:[#allocation1] ss:$9 sm:$0xff] %v139_v11  ;;  %411 = vperm.xlu1 %548, %v274_v14   ;;  %v183_v2 = vperm.slane %v87_v60, 4  ;;  %v184_v3 = vperm.slane %v87_v60, 5  ;;  %v185_v4 = vperm.slane %v87_v60, 6  ;;  %v186_v5 = vperm.slane %v87_v60, 7 }
  0x8c   :  { %276 = vst [vmem:[#allocation1 + $0x1] ss:$9 sm:$0xff] %v140_v12  ;;  %v187_v7 = vperm.slane %v90_v6, 0  ;;  %v188_v8 = vperm.slane %v90_v6, 1  ;;  %v189_v9 = vperm.slane %v90_v6, 2  ;;  %v190_v11 = vperm.slane %v90_v6, 3 }
  0x8d   :  { %277 = vst [vmem:[#allocation1 + $0x2] ss:$9 sm:$0xff] %v141_v13  ;;  %v191_v12 = vperm.slane %v90_v6, 4  ;;  %v192_v13 = vperm.slane %v90_v6, 5  ;;  %v193_v14 = vperm.slane %v90_v6, 6 }
  0x8e   :  { %278 = vst [vmem:[#allocation1 + $0x3] ss:$9 sm:$0xff] %v142_v15  ;;  %v194_v15 = vperm.slane %v90_v6, 7 }
  0x8f   :  { %279 = vst [vmem:[#allocation1 + $0x4] ss:$9 sm:$0xff] %v143_v16  ;;  %v93_v16 = vpop.xlane.xlu2 %92 }
  0x90   :  { %280 = vst [vmem:[#allocation1 + $0x5] ss:$9 sm:$0xff] %v144_v17  ;;  %v195_v17 = vperm.slane %v93_v16, 0 }
  0x91   :  { %281 = vst [vmem:[#allocation1 + $0x6] ss:$9 sm:$0xff] %v145_v18  ;;  %v196_v18 = vperm.slane %v93_v16, 1 }
  0x92   :  { %282 = vst [vmem:[#allocation1 + $0x7] ss:$9 sm:$0xff] %v146_v19  ;;  %v197_v19 = vperm.slane %v93_v16, 2 }
  0x99   :  { %v283_v24 = vld [vmem:[#allocation1] sm:$0xff] }
  0x9a   :  { %284 = vst [vmem:[#allocation1] ss:$9 sm:$0xff] %v147_v21  ;;  %414 = vperm.xlu2 %549, %v283_v24   ;;  %v198_v21 = vperm.slane %v93_v16, 3  ;;  %v201_v24 = vperm.slane %v93_v16, 6 }
  0x9b   :  { %285 = vst [vmem:[#allocation1 + $0x1] ss:$9 sm:$0xff] %v148_v22  ;;  %v199_v22 = vperm.slane %v93_v16, 4 }
  0x9c   :  { %286 = vst [vmem:[#allocation1 + $0x2] ss:$9 sm:$0xff] %v149_v23  ;;  %v200_v23 = vperm.slane %v93_v16, 5 }
  0x9d   :  { %287 = vst [vmem:[#allocation1 + $0x3] ss:$9 sm:$0xff] %v150_v25  ;;  %v202_v25 = vperm.slane %v93_v16, 7 }
  0x9e   :  { %288 = vst [vmem:[#allocation1 + $0x4] ss:$9 sm:$0xff] %v151_v26  ;;  %v96_v26 = vpop.xlane.xlu0 %95 }
  0x9f   :  { %289 = vst [vmem:[#allocation1 + $0x5] ss:$9 sm:$0xff] %v152_v27  ;;  %v203_v27 = vperm.slane %v96_v26, 0 }
  0xa0   :  { %290 = vst [vmem:[#allocation1 + $0x6] ss:$9 sm:$0xff] %v153_v28  ;;  %v204_v28 = vperm.slane %v96_v26, 1 }
  0xa1   :  { %291 = vst [vmem:[#allocation1 + $0x7] ss:$9 sm:$0xff] %v154_v29  ;;  %v205_v29 = vperm.slane %v96_v26, 2 }
  0xa8   :  { %v292_v34 = vld [vmem:[#allocation1] sm:$0xff] }
  0xa9   :  { %293 = vst [vmem:[#allocation1] ss:$9 sm:$0xff] %v155_v31  ;;  %417 = vperm.xlu0 %550, %v292_v34   ;;  %v206_v31 = vperm.slane %v96_v26, 3  ;;  %v209_v34 = vperm.slane %v96_v26, 6 }
  0xaa   :  { %294 = vst [vmem:[#allocation1 + $0x1] ss:$9 sm:$0xff] %v156_v32  ;;  %v207_v32 = vperm.slane %v96_v26, 4 }
  0xab   :  { %295 = vst [vmem:[#allocation1 + $0x2] ss:$9 sm:$0xff] %v157_v33  ;;  %v208_v33 = vperm.slane %v96_v26, 5 }
  0xac   :  { %296 = vst [vmem:[#allocation1 + $0x3] ss:$9 sm:$0xff] %v158_v35  ;;  %v210_v35 = vperm.slane %v96_v26, 7 }
  0xad   :  { %297 = vst [vmem:[#allocation1 + $0x4] ss:$9 sm:$0xff] %v159_v36  ;;  %v99_v36 = vpop.xlane.xlu1 %98 }
  0xae   :  { %298 = vst [vmem:[#allocation1 + $0x5] ss:$9 sm:$0xff] %v160_v37  ;;  %v211_v37 = vperm.slane %v99_v36, 0 }
  0xaf   :  { %299 = vst [vmem:[#allocation1 + $0x6] ss:$9 sm:$0xff] %v161_v38  ;;  %v212_v38 = vperm.slane %v99_v36, 1 }
  0xb0   :  { %300 = vst [vmem:[#allocation1 + $0x7] ss:$9 sm:$0xff] %v162_v39  ;;  %v213_v39 = vperm.slane %v99_v36, 2 }
  0xb7   :  { %v301_v44 = vld [vmem:[#allocation1] sm:$0xff] }
  0xb8   :  { %302 = vst [vmem:[#allocation1] ss:$9 sm:$0xff] %v163_v41  ;;  %420 = vperm.xlu2 %549, %v301_v44   ;;  %v214_v41 = vperm.slane %v99_v36, 3  ;;  %v217_v44 = vperm.slane %v99_v36, 6 }
  0xb9   :  { %303 = vst [vmem:[#allocation1 + $0x1] ss:$9 sm:$0xff] %v164_v42  ;;  %v215_v42 = vperm.slane %v99_v36, 4 }
  0xba   :  { %304 = vst [vmem:[#allocation1 + $0x2] ss:$9 sm:$0xff] %v165_v43  ;;  %v216_v43 = vperm.slane %v99_v36, 5 }
  0xbb   :  { %305 = vst [vmem:[#allocation1 + $0x3] ss:$9 sm:$0xff] %v166_v45  ;;  %v218_v45 = vperm.slane %v99_v36, 7 }
  0xbc   :  { %306 = vst [vmem:[#allocation1 + $0x4] ss:$9 sm:$0xff] %v167_v46  ;;  %v102_v46 = vpop.xlane.xlu2 %101 }
  0xbd   :  { %307 = vst [vmem:[#allocation1 + $0x5] ss:$9 sm:$0xff] %v168_v47  ;;  %v219_v47 = vperm.slane %v102_v46, 0 }
  0xbe   :  { %308 = vst [vmem:[#allocation1 + $0x6] ss:$9 sm:$0xff] %v169_v48  ;;  %v220_v48 = vperm.slane %v102_v46, 1 }
  0xbf   :  { %309 = vst [vmem:[#allocation1 + $0x7] ss:$9 sm:$0xff] %v170_v49  ;;  %v221_v49 = vperm.slane %v102_v46, 2 }
  0xc6   :  { %v310_v54 = vld [vmem:[#allocation1] sm:$0xff] }
  0xc7   :  { %311 = vst [vmem:[#allocation1] ss:$9 sm:$0xff] %v171_v51  ;;  %423 = vperm.xlu1 %548, %v310_v54   ;;  %v222_v51 = vperm.slane %v102_v46, 3  ;;  %v225_v54 = vperm.slane %v102_v46, 6 }
  0xc8   :  { %312 = vst [vmem:[#allocation1 + $0x1] ss:$9 sm:$0xff] %v172_v52  ;;  %v223_v52 = vperm.slane %v102_v46, 4 }
  0xc9   :  { %313 = vst [vmem:[#allocation1 + $0x2] ss:$9 sm:$0xff] %v173_v53  ;;  %v224_v53 = vperm.slane %v102_v46, 5 }
  0xca   :  { %314 = vst [vmem:[#allocation1 + $0x3] ss:$9 sm:$0xff] %v174_v55  ;;  %v226_v55 = vperm.slane %v102_v46, 7 }
  0xcb   :  { %315 = vst [vmem:[#allocation1 + $0x4] ss:$9 sm:$0xff] %v175_v56  ;;  %v105_v56 = vpop.xlane.xlu0 %104 }
  0xcc   :  { %316 = vst [vmem:[#allocation1 + $0x5] ss:$9 sm:$0xff] %v176_v57  ;;  %v227_v57 = vperm.slane %v105_v56, 0 }
  0xcd   :  { %317 = vst [vmem:[#allocation1 + $0x6] ss:$9 sm:$0xff] %v177_v58  ;;  %v228_v58 = vperm.slane %v105_v56, 1 }
  0xce   :  { %318 = vst [vmem:[#allocation1 + $0x7] ss:$9 sm:$0xff] %v178_v59  ;;  %v229_v59 = vperm.slane %v105_v56, 2 }
  0xd5   :  { %v319_v0 = vld [vmem:[#allocation1] sm:$0xff] }
  0xd6   :  { %320 = vst [vmem:[#allocation1] ss:$9 sm:$0xff] %v179_v61  ;;  %426 = vperm.xlu2 %549, %v319_v0   ;;  %v230_v61 = vperm.slane %v105_v56, 3  ;;  %v233_v0 = vperm.slane %v105_v56, 6 }
  0xd7   :  { %321 = vst [vmem:[#allocation1 + $0x1] ss:$9 sm:$0xff] %v180_v62  ;;  %v231_v62 = vperm.slane %v105_v56, 4 }
  0xd8   :  { %322 = vst [vmem:[#allocation1 + $0x2] ss:$9 sm:$0xff] %v181_v63  ;;  %v232_v63 = vperm.slane %v105_v56, 5 }
  0xd9   :  { %323 = vst [vmem:[#allocation1 + $0x3] ss:$9 sm:$0xff] %v182_v1  ;;  %v234_v1 = vperm.slane %v105_v56, 7 }
  0xda   :  { %324 = vst [vmem:[#allocation1 + $0x4] ss:$9 sm:$0xff] %v183_v2  ;;  %v108_v2 = vpop.xlane.xlu1 %107 }
  0xdb   :  { %325 = vst [vmem:[#allocation1 + $0x5] ss:$9 sm:$0xff] %v184_v3  ;;  %v235_v3 = vperm.slane %v108_v2, 0 }
  0xdc   :  { %326 = vst [vmem:[#allocation1 + $0x6] ss:$9 sm:$0xff] %v185_v4  ;;  %v236_v4 = vperm.slane %v108_v2, 1 }
  0xdd   :  { %327 = vst [vmem:[#allocation1 + $0x7] ss:$9 sm:$0xff] %v186_v5  ;;  %v237_v5 = vperm.slane %v108_v2, 2 }
  0xe4   :  { %v328_v10 = vld [vmem:[#allocation1] sm:$0xff] }
  0xe5   :  { %329 = vst [vmem:[#allocation1] ss:$9 sm:$0xff] %v187_v7  ;;  %429 = vperm.xlu1 %548, %v328_v10   ;;  %v238_v7 = vperm.slane %v108_v2, 3  ;;  %v241_v10 = vperm.slane %v108_v2, 6 }
  0xe6   :  { %330 = vst [vmem:[#allocation1 + $0x1] ss:$9 sm:$0xff] %v188_v8  ;;  %v239_v8 = vperm.slane %v108_v2, 4 }
  0xe7   :  { %331 = vst [vmem:[#allocation1 + $0x2] ss:$9 sm:$0xff] %v189_v9  ;;  %v240_v9 = vperm.slane %v108_v2, 5 }
  0xe8   :  { %332 = vst [vmem:[#allocation1 + $0x3] ss:$9 sm:$0xff] %v190_v11  ;;  %v242_v11 = vperm.slane %v108_v2, 7 }
  0xe9   :  { %333 = vst [vmem:[#allocation1 + $0x4] ss:$9 sm:$0xff] %v191_v12  ;;  %v111_v12 = vpop.xlane.xlu2 %110 }
  0xea   :  { %334 = vst [vmem:[#allocation1 + $0x5] ss:$9 sm:$0xff] %v192_v13  ;;  %v243_v13 = vperm.slane %v111_v12, 0  ;;  %v246_v16 = vperm.slane %v111_v12, 3 }
  0xeb   :  { %335 = vst [vmem:[#allocation1 + $0x6] ss:$9 sm:$0xff] %v193_v14  ;;  %v244_v14 = vperm.slane %v111_v12, 1 }
  0xec   :  { %336 = vst [vmem:[#allocation1 + $0x7] ss:$9 sm:$0xff] %v194_v15  ;;  %v245_v15 = vperm.slane %v111_v12, 2 }
  0xf3   :  { %v337_v20 = vld [vmem:[#allocation1] sm:$0xff] }
  0xf4   :  { %338 = vst [vmem:[#allocation1] ss:$9 sm:$0xff] %v195_v17  ;;  %432 = vperm.xlu2 %549, %v337_v20   ;;  %v249_v20 = vperm.slane %v111_v12, 6 }
  0xf5   :  { %339 = vst [vmem:[#allocation1 + $0x1] ss:$9 sm:$0xff] %v196_v18  ;;  %v247_v18 = vperm.slane %v111_v12, 4 }
  0xf6   :  { %340 = vst [vmem:[#allocation1 + $0x2] ss:$9 sm:$0xff] %v197_v19  ;;  %v248_v19 = vperm.slane %v111_v12, 5 }
  0xf7   :  { %341 = vst [vmem:[#allocation1 + $0x3] ss:$9 sm:$0xff] %v198_v21  ;;  %v250_v21 = vperm.slane %v111_v12, 7 }
  0xf8   :  { %342 = vst [vmem:[#allocation1 + $0x4] ss:$9 sm:$0xff] %v199_v22  ;;  %v114_v22 = vpop.xlane.xlu0 %113 }
  0xf9   :  { %343 = vst [vmem:[#allocation1 + $0x5] ss:$9 sm:$0xff] %v200_v23  ;;  %v251_v23 = vperm.slane %v114_v22, 0  ;;  %v254_v26 = vperm.slane %v114_v22, 3 }
  0xfa   :  { %344 = vst [vmem:[#allocation1 + $0x6] ss:$9 sm:$0xff] %v201_v24  ;;  %v252_v24 = vperm.slane %v114_v22, 1 }
  0xfb   :  { %345 = vst [vmem:[#allocation1 + $0x7] ss:$9 sm:$0xff] %v202_v25  ;;  %v253_v25 = vperm.slane %v114_v22, 2 }
 0x102   :  { %v346_v30 = vld [vmem:[#allocation1] sm:$0xff] }
 0x103   :  { %347 = vst [vmem:[#allocation1] ss:$9 sm:$0xff] %v203_v27  ;;  %435 = vperm.xlu1 %548, %v346_v30   ;;  %v257_v30 = vperm.slane %v114_v22, 6 }
 0x104   :  { %348 = vst [vmem:[#allocation1 + $0x1] ss:$9 sm:$0xff] %v204_v28  ;;  %v255_v28 = vperm.slane %v114_v22, 4 }
 0x105   :  { %349 = vst [vmem:[#allocation1 + $0x2] ss:$9 sm:$0xff] %v205_v29  ;;  %v256_v29 = vperm.slane %v114_v22, 5 }
 0x106   :  { %350 = vst [vmem:[#allocation1 + $0x3] ss:$9 sm:$0xff] %v206_v31  ;;  %v258_v31 = vperm.slane %v114_v22, 7 }
 0x107   :  { %351 = vst [vmem:[#allocation1 + $0x4] ss:$9 sm:$0xff] %v207_v32 }
 0x108   :  { %352 = vst [vmem:[#allocation1 + $0x5] ss:$9 sm:$0xff] %v208_v33  ;;  %v412_v33 = vpop.permute.xlu1 %411 }
 0x109   :  { %353 = vst [vmem:[#allocation1 + $0x6] ss:$9 sm:$0xff] %v209_v34  ;;  %v415_v34 = vpop.permute.xlu2 %414 }
 0x10a   :  { %354 = vst [vmem:[#allocation1 + $0x7] ss:$9 sm:$0xff] %v210_v35 }
 0x111   :  { %v355_v40 = vld [vmem:[#allocation1] sm:$0xff] }
 0x112   :  { %356 = vst [vmem:[#allocation1] ss:$9 sm:$0xff] %v211_v37  ;;  %438 = vperm.xlu0 %550, %v355_v40   ;;  %v421_v36 = vpop.permute.xlu2 %420  ;;  %v578_v37 = vmov 0.0  }
 0x113   :  { %357 = vst [vmem:[#allocation1 + $0x1] ss:$9 sm:$0xff] %v212_v38  ;;  %v458_v38 = vlaneseq }
 0x114   :  { %358 = vst [vmem:[#allocation1 + $0x2] ss:$9 sm:$0xff] %v213_v39 }
 0x115   :  { %359 = vst [vmem:[#allocation1 + $0x3] ss:$9 sm:$0xff] %v214_v41  ;;  %v707_v39 = vand.u32 127, %v458_v38 }
 0x116   :  { %360 = vst [vmem:[#allocation1 + $0x4] ss:$9 sm:$0xff] %v215_v42 }
 0x117   :  { %361 = vst [vmem:[#allocation1 + $0x5] ss:$9 sm:$0xff] %v216_v43  ;;  %v465_v42 = vadd.s32 4294967280, %v707_v39  ;;  %v461_v43 = vadd.s32 4294967288, %v707_v39 }
 0x118   :  { %362 = vst [vmem:[#allocation1 + $0x6] ss:$9 sm:$0xff] %v217_v44 }
 0x119   :  { %363 = vst [vmem:[#allocation1 + $0x7] ss:$9 sm:$0xff] %v218_v45  ;;  %v460_v45 = vperm.slane %v412_v33, %v707_v39 }
 0x11a   :  { %16 = vst [vmem:[#allocation2] sm:$0x1] %v578_v37 }
 0x11b   :  { %v418_v44 = vpop.permute.xlu0 %417 }
 0x11c   :  { %v466_v46 = vperm.slane %v418_v44, %v465_v42 }
 0x120   :  { %v364_v50 = vld [vmem:[#allocation1] sm:$0xff] }
 0x121   :  { %365 = vst [vmem:[#allocation1] ss:$9 sm:$0xff] %v219_v47  ;;  %441 = vperm.xlu2 %549, %v364_v50   ;;  %v473_v47 = vadd.s32 4294967264, %v707_v39 }
 0x122   :  { %366 = vst [vmem:[#allocation1 + $0x1] ss:$9 sm:$0xff] %v220_v48  ;;  %v462_v48 = vperm.slane %v415_v34, %v461_v43 }
 0x123   :  { %367 = vst [vmem:[#allocation1 + $0x2] ss:$9 sm:$0xff] %v221_v49  ;;  %v469_v49 = vadd.s32 4294967272, %v707_v39 }
 0x124   :  { %368 = vst [vmem:[#allocation1 + $0x3] ss:$9 sm:$0xff] %v222_v51  ;;  %v464_v50 = vsel %vm463_vm1, %v462_v48, %v460_v45 }
 0x125   :  { %369 = vst [vmem:[#allocation1 + $0x4] ss:$9 sm:$0xff] %v223_v52  ;;  %v468_v52 = vsel %vm467_vm2, %v466_v46, %v464_v50  ;;  %v470_v56 = vperm.slane %v421_v36, %v469_v49 }
 0x126   :  { %370 = vst [vmem:[#allocation1 + $0x5] ss:$9 sm:$0xff] %v224_v53 }
 0x127   :  { %371 = vst [vmem:[#allocation1 + $0x6] ss:$9 sm:$0xff] %v225_v54 }
 0x128   :  { %372 = vst [vmem:[#allocation1 + $0x7] ss:$9 sm:$0xff] %v226_v55  ;;  %v481_v55 = vadd.s32 4294967248, %v707_v39 }
 0x12f   :  { %v373_v60 = vld [vmem:[#allocation1] sm:$0xff] }
 0x130   :  { %374 = vst [vmem:[#allocation1] ss:$9 sm:$0xff] %v227_v57  ;;  %444 = vperm.xlu1 %548, %v373_v60   ;;  %v427_v41 = vpop.permute.xlu2 %426  ;;  %v477_v57 = vadd.s32 4294967256, %v707_v39 }
 0x131   :  { %375 = vst [vmem:[#allocation1 + $0x1] ss:$9 sm:$0xff] %v228_v58  ;;  %v472_v58 = vsel %vm471_vm3, %v470_v56, %v468_v52 }
 0x132   :  { %376 = vst [vmem:[#allocation1 + $0x2] ss:$9 sm:$0xff] %v229_v59 }
 0x133   :  { %377 = vst [vmem:[#allocation1 + $0x3] ss:$9 sm:$0xff] %v230_v61 }
 0x134   :  { %378 = vst [vmem:[#allocation1 + $0x4] ss:$9 sm:$0xff] %v231_v62  ;;  %v489_v62 = vadd.s32 4294967232, %v707_v39 }
 0x135   :  { %379 = vst [vmem:[#allocation1 + $0x5] ss:$9 sm:$0xff] %v232_v63  ;;  %v478_v63 = vperm.slane %v427_v41, %v477_v57 }
 0x136   :  { %380 = vst [vmem:[#allocation1 + $0x6] ss:$9 sm:$0xff] %v233_v0  ;;  %v485_v0 = vadd.s32 4294967240, %v707_v39 }
 0x137   :  { %381 = vst [vmem:[#allocation1 + $0x7] ss:$9 sm:$0xff] %v234_v1  ;;  %v493_v1 = vadd.s32 4294967224, %v707_v39 }
 0x139   :  { %v424_v35 = vpop.permute.xlu1 %423 }
 0x13a   :  { %v474_v53 = vperm.slane %v424_v35, %v473_v47 }
 0x13c   :  { %v476_v60 = vsel %vm475_vm4, %v474_v53, %v472_v58 }
 0x13d   :  { %v480_v2 = vsel %vm479_vm5, %v478_v63, %v476_v60 }
 0x13e   :  { %v382_v6 = vld [vmem:[#allocation1] sm:$0xff] }
 0x13f   :  { %383 = vst [vmem:[#allocation1] ss:$9 sm:$0xff] %v235_v3  ;;  %447 = vperm.xlu0 %550, %v382_v6  }
 0x140   :  { %384 = vst [vmem:[#allocation1 + $0x1] ss:$9 sm:$0xff] %v236_v4 }
 0x141   :  { %385 = vst [vmem:[#allocation1 + $0x2] ss:$9 sm:$0xff] %v237_v5 }
 0x142   :  { %386 = vst [vmem:[#allocation1 + $0x3] ss:$9 sm:$0xff] %v238_v7 }
 0x143   :  { %387 = vst [vmem:[#allocation1 + $0x4] ss:$9 sm:$0xff] %v239_v8 }
 0x144   :  { %388 = vst [vmem:[#allocation1 + $0x5] ss:$9 sm:$0xff] %v240_v9  ;;  %v501_v9 = vadd.s32 4294967208, %v707_v39 }
 0x145   :  { %389 = vst [vmem:[#allocation1 + $0x6] ss:$9 sm:$0xff] %v241_v10  ;;  %v497_v10 = vadd.s32 4294967216, %v707_v39 }
 0x146   :  { %390 = vst [vmem:[#allocation1 + $0x7] ss:$9 sm:$0xff] %v242_v11  ;;  %v505_v11 = vadd.s32 4294967200, %v707_v39 }
 0x14d   :  { %v391_v17 = vld [vmem:[#allocation1] sm:$0xff] }
 0x14e   :  { %450 = vperm.xlu2 %549, %v391_v17   ;;  %392 = vst [vmem:[#allocation1] ss:$9 sm:$0xff] %v243_v13  ;;  %v433_v54 = vpop.permute.xlu2 %432 }
 0x14f   :  { %393 = vst [vmem:[#allocation1 + $0x1] ss:$9 sm:$0xff] %v244_v14  ;;  %v486_v7 = vperm.slane %v433_v54, %v485_v0 }
 0x150   :  { %394 = vst [vmem:[#allocation1 + $0x2] ss:$9 sm:$0xff] %v245_v15 }
 0x151   :  { %395 = vst [vmem:[#allocation1 + $0x3] ss:$9 sm:$0xff] %v246_v16 }
 0x152   :  { %396 = vst [vmem:[#allocation1 + $0x4] ss:$9 sm:$0xff] %v247_v18 }
 0x153   :  { %397 = vst [vmem:[#allocation1 + $0x5] ss:$9 sm:$0xff] %v248_v19  ;;  %v513_v19 = vadd.s32 4294967184, %v707_v39 }
 0x154   :  { %398 = vst [vmem:[#allocation1 + $0x6] ss:$9 sm:$0xff] %v249_v20  ;;  %v509_v20 = vadd.s32 4294967192, %v707_v39 }
 0x155   :  { %399 = vst [vmem:[#allocation1 + $0x7] ss:$9 sm:$0xff] %v250_v21 }
 0x157   :  { %v430_v40 = vpop.permute.xlu1 %429 }
 0x158   :  { %v482_v61 = vperm.slane %v430_v40, %v481_v55 }
 0x15a   :  { %v484_v4 = vsel %vm483_vm6, %v482_v61, %v480_v2 }
 0x15b   :  { %v488_v12 = vsel %vm487_vm7, %v486_v7, %v484_v4 }
 0x15c   :  { %v400_v27 = vld [vmem:[#allocation1] sm:$0xff] }
 0x15d   :  { %453 = vperm.xlu1 %548, %v400_v27   ;;  %401 = vst [vmem:[#allocation1] ss:$9 sm:$0xff] %v251_v23 }
 0x15e   :  { %402 = vst [vmem:[#allocation1 + $0x1] ss:$9 sm:$0xff] %v252_v24 }
 0x15f   :  { %403 = vst [vmem:[#allocation1 + $0x2] ss:$9 sm:$0xff] %v253_v25  ;;  %v517_v25 = vadd.s32 4294967176, %v707_v39 }
 0x160   :  { %404 = vst [vmem:[#allocation1 + $0x3] ss:$9 sm:$0xff] %v254_v26 }
 0x161   :  { %405 = vst [vmem:[#allocation1 + $0x4] ss:$9 sm:$0xff] %v255_v28 }
 0x162   :  { %406 = vst [vmem:[#allocation1 + $0x5] ss:$9 sm:$0xff] %v256_v29 }
 0x163   :  { %407 = vst [vmem:[#allocation1 + $0x6] ss:$9 sm:$0xff] %v257_v30 }
 0x164   :  { %408 = vst [vmem:[#allocation1 + $0x7] ss:$9 sm:$0xff] %v258_v31  ;;  %v65_v31 = vld [vmem:[#allocation2] sm:$0x1] }
 0x16b   :  { %v409_v32 = vld [vmem:[#allocation1] sm:$0xff] }
 0x16c   :  { %456 = vperm.xlu0 %550, %v409_v32  }
 0x175   :  { %v436_v51 = vpop.permute.xlu1 %435 }
 0x176   :  { %v490_v6 = vperm.slane %v436_v51, %v489_v62 }
 0x178   :  { %v492_v14 = vsel %vm491_vm8, %v490_v6, %v488_v12 }
 0x17b   :  { %v442_v5 = vpop.permute.xlu2 %441 }
 0x17c   :  { %v498_v17 = vperm.slane %v442_v5, %v497_v10 }
 0x184   :  { %v439_v59 = vpop.permute.xlu0 %438 }
 0x185   :  { %v494_v8 = vperm.slane %v439_v59, %v493_v1 }
 0x187   :  { %v496_v15 = vsel %vm495_vm9, %v494_v8, %v492_v14 }
 0x188   :  { %v500_v23 = vsel %vm499_vm10, %v498_v17, %v496_v15 }
 0x1a2   :  { %v445_v3 = vpop.permute.xlu1 %444 }
 0x1a3   :  { %v502_v16 = vperm.slane %v445_v3, %v501_v9 }
 0x1a5   :  { %v504_v24 = vsel %vm503_vm11, %v502_v16, %v500_v23 }
 0x1a8   :  { %v451_v22 = vpop.permute.xlu2 %450 }
 0x1a9   :  { %v510_v28 = vperm.slane %v451_v22, %v509_v20 }
 0x1b1   :  { %v448_v13 = vpop.permute.xlu0 %447 }
 0x1b2   :  { %v506_v18 = vperm.slane %v448_v13, %v505_v11 }
 0x1b4   :  { %v508_v26 = vsel %vm507_vm12, %v506_v18, %v504_v24 }
 0x1b5   :  { %v512_v30 = vsel %vm511_vm13, %v510_v28, %v508_v26 }
 0x1cf   :  { %v454_v21 = vpop.permute.xlu1 %453 }
 0x1d0   :  { %v514_v27 = vperm.slane %v454_v21, %v513_v19 }
 0x1d2   :  { %v516_v33 = vsel %vm515_vm14, %v514_v27, %v512_v30 }
 0x1de   :  { %v457_v29 = vpop.permute.xlu0 %456 }
 0x1df   :  { %v518_v32 = vperm.slane %v457_v29, %v517_v25 }
 0x1e1   :  { %v520_v34 = vsel %vm519_vm15, %v518_v32, %v516_v33 }
 0x1e2   :  { %v522_v35 = vadd.f32 %v520_v34, %v65_v31 }
 0x1e4   :  { %523 = vst [vmem:[#allocation2] sm:$0x1] %v522_v35 }
 0x1eb   :  { %v527_v36 = vld [vmem:[#allocation2] sm:$0x1] }
 0x1ec   :  { %528 = vst [vmem:[#allocation3] sm:$0x1] %v527_v36 }
 0x1ed   :  { %539 = dma.vmem_to_hbm [thread:$0]  %s535_s1, 16, %s537_s19, [#allocation4]  }
 0x1ee   :  { %575 = dma.done.wait [#allocation4], 16  }
 0x1ef   :  { %576 = vsyncadd [#allocation4], 4294967280 }
 0x1f0   :  { %544 = vsyncpa [#allocation4], 1 }

</bundles_post_ra>
